<compile_context>
chip_gen: v6e
topology: v6e:2x2x1
jax: 0.10.0
libtpu: 0.0.40
codegen_flags: <defaults>
</compile_context>

<pallas_src>
import functools

import jax
import jax.numpy as jnp
from jax import lax
from jax.experimental import pallas as pl
from jax.experimental.pallas import tpu as pltpu

_H1, _H2 = 32, 16          # conv1 / conv2 output channels
_BF16_ORDER = ("w1_cat", "w2_bd", "c1_root", "c2_root", "rep1", "sel1", "rep2", "sel2")
_F32_ORDER = ("b1_cat", "b2_cat", "c1_bias", "c2_bias", "fc1_b", "out_b", "fc1_w", "out_w")
_BF16_ROW_ALIGN = 16       # native bf16 sublane tile (16,128)
_F32_ROW_ALIGN = 8         # native f32 sublane tile (8,128)


# ----------------------------------------------------------------------------
# Static parameter layout (row-block packing into a single 2-D buffer per dtype)
# ----------------------------------------------------------------------------
def _param_shapes(fin, fe):
    w1, w2 = fin * _H1, _H1 * _H2
    bf = {
        "w1_cat": (fe, 2 * _H1),          # both edge-MLP layer-1 weights, concatenated
        "w2_bd": (2 * _H1, w1 + w2),      # both edge-MLP layer-2 weights, block-diagonal
        "c1_root": (fin, _H1), "c2_root": (_H1, _H2),
        "rep1": (fin, w1), "sel1": (w1, _H1),
        "rep2": (_H1, w2), "sel2": (w2, _H2),
    }
    f32 = {
        "b1_cat": (1, 2 * _H1), "b2_cat": (1, w1 + w2),
        "c1_bias": (1, _H1), "c2_bias": (1, _H2),
        "fc1_b": (1, _H1), "out_b": (1, 1),
        "fc1_w": (_H2, _H1), "out_w": (_H1, 1),
    }
    return bf, f32


def _layout(shapes, order, row_align):
    """name -> (row_off, rows, cols); row offsets tile-aligned, width lane-aligned."""
    lay, off, width = {}, 0, 0
    for name in order:
        r, c = shapes[name]
        lay[name] = (off, r, c)
        off += -(-r // row_align) * row_align
        width = max(width, c)
    width = -(-width // 128) * 128
    return lay, off, width


def _pack(entries, lay, rows, width, dtype):
    buf = jnp.zeros((rows, width), dtype)
    for name, arr in entries.items():
        off, r, c = lay[name]
        buf = buf.at[off:off + r, 0:c].set(jnp.asarray(arr).astype(dtype))
    return buf


def _rep_sel(fin, fout):
    """0/1 replication [Fin, Fin*Fout] and selection [Fin*Fout, Fout] matrices:
    rep[f, f*Fout+o] = 1, sel[f*Fout+o, o] = 1. Exact in bf16; they turn the
    per-edge matmul into lane-dense MXU work (replicate -> VPU mul -> MXU reduce)."""
    rep = jnp.repeat(jnp.eye(fin, dtype=jnp.float32), fout, axis=1)
    sel = jnp.tile(jnp.eye(fout, dtype=jnp.float32), (fin, 1))
    return rep, sel


# ----------------------------------------------------------------------------
# Fused kernel: conv1+ReLU -> conv2+ReLU -> global_add_pool -> fc_1+ReLU -> out
# Everything resident in VMEM (toy graph-sized blocks, grid-less).
# ----------------------------------------------------------------------------
def examplenet_kernel(x_ref, ea_ref, src_ref, idxr_ref, wbf_ref, wf_ref, out_ref, *,
                      bf_lay, f32_lay, n, e, b, fin):
    def bw(name):                      # bf16 packed-weight slice (static offsets)
        off, r, c = bf_lay[name]
        return wbf_ref[off:off + r, 0:c]

    def fw(name):                      # f32 packed bias / head-weight slice
        off, r, c = f32_lay[name]
        return wf_ref[off:off + r, 0:c]

    x_bf = x_ref[...].astype(jnp.bfloat16)                    # [N, Fin]
    ea_bf = ea_ref[...].astype(jnp.bfloat16)                  # [E, Fe]

    # --- build gather / scatter / pool 0/1 matrices in-kernel (no O(E*N) HBM traffic)
    src = src_ref[...]                                        # [E, 1] i32
    iota_en = lax.broadcasted_iota(jnp.int32, (e, n), 1)
    src_oh = jnp.where(src == iota_en, 1.0, 0.0).astype(jnp.bfloat16)       # [E, N]

    tgt_row = idxr_ref[0:1, 0:e]                              # [1, E] i32
    iota_ne = lax.broadcasted_iota(jnp.int32, (n, e), 0)
    tgt_ohT = jnp.where(tgt_row == iota_ne, 1.0, 0.0).astype(jnp.bfloat16)  # [N, E]

    bat_row = idxr_ref[1:2, 0:n]                              # [1, N] i32
    iota_bn = lax.broadcasted_iota(jnp.int32, (b, n), 0)
    bat_oh = jnp.where(bat_row == iota_bn, 1.0, 0.0).astype(jnp.bfloat16)   # [B, N]

    # --- fused edge MLPs: both convs' nn(edge_attr) in one pair of matmuls
    h = jnp.dot(ea_bf, bw("w1_cat"), preferred_element_type=jnp.float32) + fw("b1_cat")
    h = jnp.maximum(h, 0.0).astype(jnp.bfloat16)                            # [E, 64]
    wedge_all = (jnp.dot(h, bw("w2_bd"), preferred_element_type=jnp.float32)
                 + fw("b2_cat")).astype(jnp.bfloat16)                        # [E, Fin*32+512]
    w1cols = fin * _H1
    wedge1 = wedge_all[:, 0:w1cols]                                          # [E, Fin*32]
    wedge2 = wedge_all[:, w1cols:w1cols + _H1 * _H2]                         # [E, 512]

    def nnconv_relu(x_in_bf, wedge, rep, sel, wroot, bias):
        # gather source-node features (exact 0/1 MXU matmul)
        x_src = jnp.dot(src_oh, x_in_bf, preferred_element_type=jnp.float32)      # [E, F]
        # lane-dense per-edge matmul: replicate over Fout lanes, bf16 VPU mul,
        # reduce over Fin via the 0/1 selection matmul (f32 accumulate on MXU)
        x_rep = jnp.dot(x_src.astype(jnp.bfloat16), rep,
                        preferred_element_type=jnp.float32).astype(jnp.bfloat16)  # [E, F*Fout]
        msg = jnp.dot(x_rep * wedge, sel, preferred_element_type=jnp.float32)     # [E, Fout]
        # scatter-add messages to target nodes (transposed one-hot matmul)
        agg = jnp.dot(tgt_ohT, msg.astype(jnp.bfloat16),
                      preferred_element_type=jnp.float32)                         # [N, Fout]
        root = jnp.dot(x_in_bf, wroot, preferred_element_type=jnp.float32)
        return jnp.maximum(agg + root + bias, 0.0)                                # f32 ReLU

    x1 = nnconv_relu(x_bf, wedge1, bw("rep1"), bw("sel1"), bw("c1_root"), fw("c1_bias"))
    x2 = nnconv_relu(x1.astype(jnp.bfloat16), wedge2, bw("rep2"), bw("sel2"),
                     bw("c2_root"), fw("c2_bias"))                                # [N, 16]

    # --- global_add_pool + MLP head (tiny, kept f32)
    pooled = jnp.dot(bat_oh, x2.astype(jnp.bfloat16),
                     preferred_element_type=jnp.float32)                          # [B, 16]
    hh = jnp.maximum(
        jnp.dot(pooled, fw("fc1_w"), preferred_element_type=jnp.float32) + fw("fc1_b"), 0.0)
    out_ref[...] = jnp.dot(hh, fw("out_w"),
                           preferred_element_type=jnp.float32) + fw("out_b")      # [B, 1]


# ----------------------------------------------------------------------------
# Host-side: parameter packing (one-time) and forward wrapper.
# ----------------------------------------------------------------------------
def pack_params(params, num_node_features, num_edge_features):
    """Fuse the two edge-MLPs and pack everything into one bf16 + one f32 buffer."""
    fin, fe = num_node_features, num_edge_features
    p = params
    w1cols, w2cols = fin * _H1, _H1 * _H2

    w1_cat = jnp.concatenate([p["c1_w1"], p["c2_w1"]], axis=1)          # [fe, 64]
    b1_cat = jnp.concatenate([p["c1_b1"], p["c2_b1"]], axis=1)          # [1, 64]
    w2_bd = jnp.zeros((2 * _H1, w1cols + w2cols), jnp.float32)
    w2_bd = w2_bd.at[0:_H1, 0:w1cols].set(p["c1_w2"])
    w2_bd = w2_bd.at[_H1:2 * _H1, w1cols:].set(p["c2_w2"])
    b2_cat = jnp.concatenate([p["c1_b2"], p["c2_b2"]], axis=1)          # [1, w1+w2]

    rep1, sel1 = _rep_sel(fin, _H1)
    rep2, sel2 = _rep_sel(_H1, _H2)

    bf_shapes, f32_shapes = _param_shapes(fin, fe)
    bf_lay, bf_rows, bf_width = _layout(bf_shapes, _BF16_ORDER, _BF16_ROW_ALIGN)
    f32_lay, f32_rows, f32_width = _layout(f32_shapes, _F32_ORDER, _F32_ROW_ALIGN)

    wbf = _pack({"w1_cat": w1_cat, "w2_bd": w2_bd,
                 "c1_root": p["c1_root"], "c2_root": p["c2_root"],
                 "rep1": rep1, "sel1": sel1, "rep2": rep2, "sel2": sel2},
                bf_lay, bf_rows, bf_width, jnp.bfloat16)
    wf = _pack({"b1_cat": b1_cat, "b2_cat": b2_cat,
                "c1_bias": p["c1_bias"], "c2_bias": p["c2_bias"],
                "fc1_b": p["fc1_b"], "out_b": p["out_b"],
                "fc1_w": p["fc1_w"], "out_w": p["out_w"]},
               f32_lay, f32_rows, f32_width, jnp.float32)
    return wbf, wf


def example_net_forward(wbf, wf, x, edge_index, edge_attr, batch, *,
                        num_graphs, num_node_features, num_edge_features):
    n, fin = x.shape
    e = edge_attr.shape[0]

    bf_shapes, f32_shapes = _param_shapes(num_node_features, num_edge_features)
    bf_lay, _, _ = _layout(bf_shapes, _BF16_ORDER, _BF16_ROW_ALIGN)
    f32_lay, _, _ = _layout(f32_shapes, _F32_ORDER, _F32_ROW_ALIGN)

    # Indices only (no dense one-hots): src as a column, tgt/batch as rows.
    src_col = edge_index[0].astype(jnp.int32)[:, None]                   # [E, 1]
    r = max(n, e)
    idx_row = jnp.full((2, r), -1, jnp.int32)
    idx_row = idx_row.at[0, 0:e].set(edge_index[1].astype(jnp.int32))    # targets
    idx_row = idx_row.at[1, 0:n].set(batch.astype(jnp.int32))            # graph ids

    kernel = functools.partial(examplenet_kernel, bf_lay=bf_lay, f32_lay=f32_lay,
                               n=n, e=e, b=num_graphs, fin=fin)
    vmem = pl.BlockSpec(memory_space=pltpu.MemorySpace.VMEM)
    return pl.pallas_call(
        kernel,
        out_shape=jax.ShapeDtypeStruct((num_graphs, 1), jnp.float32),
        in_specs=[vmem] * 6,
        out_specs=vmem,
        compiler_params=pltpu.CompilerParams(vmem_limit_bytes=48 * 1024 * 1024),
    )(x, edge_attr, src_col, idx_row, wbf, wf)


def init_params(key, num_node_features, num_edge_features):
    ks = jax.random.split(key, 14)

    def w(k, shape):
        return (0.1 * jax.random.normal(k, shape)).astype(jnp.float32)

    fn, fe = num_node_features, num_edge_features
    return {
        # conv1 edge nn: Linear(fe,32) -> ReLU -> Linear(32, fn*32)
        "c1_w1": w(ks[0], (fe, _H1)),          "c1_b1": w(ks[1], (1, _H1)),
        "c1_w2": w(ks[2], (_H1, fn * _H1)),    "c1_b2": w(ks[3], (1, fn * _H1)),
        "c1_root": w(ks[4], (fn, _H1)),        "c1_bias": w(ks[5], (1, _H1)),
        # conv2 edge nn: Linear(fe,32) -> ReLU -> Linear(32, 32*16)
        "c2_w1": w(ks[6], (fe, _H1)),          "c2_b1": w(ks[7], (1, _H1)),
        "c2_w2": w(ks[8], (_H1, _H1 * _H2)),   "c2_b2": w(ks[9], (1, _H1 * _H2)),
        "c2_root": w(ks[10], (_H1, _H2)),      "c2_bias": w(ks[11], (1, _H2)),
        # head
        "fc1_w": w(ks[12], (_H2, _H1)),        "fc1_b": jnp.zeros((1, _H1), jnp.float32),
        "out_w": w(ks[13], (_H1, 1)),          "out_b": jnp.zeros((1, 1), jnp.float32),
    }


if __name__ == "__main__":
    # Small synthetic "QM9-like" batch: 2 graphs x 8 nodes, bidirectional ring edges.
    num_node_features = 8
    num_edge_features = 4
    num_graphs = 2
    nodes_per_graph = 8
    n = num_graphs * nodes_per_graph                                    # 16 nodes

    src_l, tgt_l = [], []
    for g in range(num_graphs):
        base = g * nodes_per_graph
        for i in range(nodes_per_graph):
            j = (i + 1) % nodes_per_graph
            src_l += [base + i, base + j]
            tgt_l += [base + j, base + i]
    edge_index = jnp.array([src_l, tgt_l], dtype=jnp.int32)             # [2, 32]
    e = edge_index.shape[1]

    key = jax.random.PRNGKey(0)
    kx, ke, kp = jax.random.split(key, 3)
    x = jax.random.normal(kx, (n, num_node_features), dtype=jnp.float32)
    edge_attr = jax.random.normal(ke, (e, num_edge_features), dtype=jnp.float32)
    batch = jnp.repeat(jnp.arange(num_graphs, dtype=jnp.int32), nodes_per_graph)

    params = init_params(kp, num_node_features, num_edge_features)
    wbf, wf = pack_params(params, num_node_features, num_edge_features)  # one-time packing

    fwd = jax.jit(functools.partial(example_net_forward,
                                    num_graphs=num_graphs,
                                    num_node_features=num_node_features,
                                    num_edge_features=num_edge_features))
    out = fwd(wbf, wf, x, edge_index, edge_attr, batch)
    jax.block_until_ready(out)
    assert out.shape == (num_graphs, 1)
    print("KERNEL_OK")
</pallas_src>

<mosaic_0001>
module attributes {stable_mosaic.version = 11 : i64} {
  func.func @examplenet_kernel(%arg0: memref<16x8xf32, #tpu.memory_space<vmem>>, %arg1: memref<32x4xf32, #tpu.memory_space<vmem>>, %arg2: memref<32x1xi32, #tpu.memory_space<vmem>>, %arg3: memref<2x32xi32, #tpu.memory_space<vmem>>, %arg4: memref<944x768xbf16, #tpu.memory_space<vmem>>, %arg5: memref<96x768xf32, #tpu.memory_space<vmem>>, %arg6: memref<2x1xf32, #tpu.memory_space<vmem>>) attributes {dimension_semantics = [], scalar_prefetch = 0 : i64, scratch_operands = 0 : i64, tpu.core_type = #tpu.core_type<tc>} {
    %c0 = arith.constant 0 : index
    %c0_0 = arith.constant 0 : index
    %0 = vector.load %arg0[%c0, %c0_0] : memref<16x8xf32, #tpu.memory_space<vmem>>, vector<16x8xf32>
    %1 = arith.truncf %0 : vector<16x8xf32> to vector<16x8xbf16>
    %c0_1 = arith.constant 0 : index
    %c0_2 = arith.constant 0 : index
    %2 = vector.load %arg1[%c0_1, %c0_2] : memref<32x4xf32, #tpu.memory_space<vmem>>, vector<32x4xf32>
    %3 = arith.truncf %2 : vector<32x4xf32> to vector<32x4xbf16>
    %c0_3 = arith.constant 0 : index
    %c0_4 = arith.constant 0 : index
    %4 = vector.load %arg2[%c0_3, %c0_4] : memref<32x1xi32, #tpu.memory_space<vmem>>, vector<32x1xi32>
    %5 = tpu.iota {dimensions = array<i32: 1>} : vector<32x16xi32>
    %6 = vector.broadcast %4 : vector<32x1xi32> to vector<32x16xi32>
    %7 = arith.cmpi eq, %6, %5 : vector<32x16xi32>
    %cst = arith.constant 1.000000e+00 : f32
    %cst_5 = arith.constant 0.000000e+00 : f32
    %8 = vector.broadcast %cst : f32 to vector<32x16xf32>
    %9 = vector.broadcast %cst_5 : f32 to vector<32x16xf32>
    %10 = arith.select %7, %8, %9 : vector<32x16xi1>, vector<32x16xf32>
    %11 = arith.truncf %10 : vector<32x16xf32> to vector<32x16xbf16>
    %c0_6 = arith.constant 0 : index
    %c0_7 = arith.constant 0 : index
    %12 = vector.load %arg3[%c0_6, %c0_7] : memref<2x32xi32, #tpu.memory_space<vmem>>, vector<1x32xi32>
    %13 = tpu.iota {dimensions = array<i32: 0>} : vector<16x32xi32>
    %14 = vector.broadcast %12 : vector<1x32xi32> to vector<16x32xi32>
    %15 = arith.cmpi eq, %14, %13 : vector<16x32xi32>
    %cst_8 = arith.constant 1.000000e+00 : f32
    %cst_9 = arith.constant 0.000000e+00 : f32
    %16 = vector.broadcast %cst_8 : f32 to vector<16x32xf32>
    %17 = vector.broadcast %cst_9 : f32 to vector<16x32xf32>
    %18 = arith.select %15, %16, %17 : vector<16x32xi1>, vector<16x32xf32>
    %19 = arith.truncf %18 : vector<16x32xf32> to vector<16x32xbf16>
    %c1 = arith.constant 1 : index
    %c0_10 = arith.constant 0 : index
    %20 = vector.load %arg3[%c1, %c0_10] : memref<2x32xi32, #tpu.memory_space<vmem>>, vector<1x16xi32>
    %21 = tpu.iota {dimensions = array<i32: 0>} : vector<2x16xi32>
    %22 = vector.broadcast %20 : vector<1x16xi32> to vector<2x16xi32>
    %23 = arith.cmpi eq, %22, %21 : vector<2x16xi32>
    %cst_11 = arith.constant 1.000000e+00 : f32
    %cst_12 = arith.constant 0.000000e+00 : f32
    %24 = vector.broadcast %cst_11 : f32 to vector<2x16xf32>
    %25 = vector.broadcast %cst_12 : f32 to vector<2x16xf32>
    %26 = arith.select %23, %24, %25 : vector<2x16xi1>, vector<2x16xf32>
    %27 = arith.truncf %26 : vector<2x16xf32> to vector<2x16xbf16>
    %c0_13 = arith.constant 0 : index
    %c0_14 = arith.constant 0 : index
    %28 = vector.load %arg4[%c0_13, %c0_14] : memref<944x768xbf16, #tpu.memory_space<vmem>>, vector<4x64xbf16>
    %cst_15 = arith.constant dense<0.000000e+00> : vector<32x64xf32>
    %29 = tpu.matmul %3, %28, %cst_15 {dimension_numbers = #tpu.dot_dimension_numbers<[1], [0], [0], [1], [0, 0, 1, 1], [], []>} : vector<32x4xbf16>, vector<4x64xbf16>, vector<32x64xf32> -> vector<32x64xf32>
    %c0_16 = arith.constant 0 : index
    %c0_17 = arith.constant 0 : index
    %30 = vector.load %arg5[%c0_16, %c0_17] : memref<96x768xf32, #tpu.memory_space<vmem>>, vector<1x64xf32>
    %31 = vector.broadcast %30 : vector<1x64xf32> to vector<32x64xf32>
    %32 = arith.addf %29, %31 : vector<32x64xf32>
    %cst_18 = arith.constant 0.000000e+00 : f32
    %33 = vector.broadcast %cst_18 : f32 to vector<32x64xf32>
    %34 = arith.maximumf %32, %33 : vector<32x64xf32>
    %35 = arith.truncf %34 : vector<32x64xf32> to vector<32x64xbf16>
    %c16 = arith.constant 16 : index
    %c0_19 = arith.constant 0 : index
    %36 = vector.load %arg4[%c16, %c0_19] : memref<944x768xbf16, #tpu.memory_space<vmem>>, vector<64x768xbf16>
    %cst_20 = arith.constant dense<0.000000e+00> : vector<32x768xf32>
    %37 = tpu.matmul %35, %36, %cst_20 {dimension_numbers = #tpu.dot_dimension_numbers<[1], [0], [0], [1], [0, 0, 1, 1], [], []>} : vector<32x64xbf16>, vector<64x768xbf16>, vector<32x768xf32> -> vector<32x768xf32>
    %c8 = arith.constant 8 : index
    %c0_21 = arith.constant 0 : index
    %38 = vector.load %arg5[%c8, %c0_21] : memref<96x768xf32, #tpu.memory_space<vmem>>, vector<1x768xf32>
    %39 = vector.broadcast %38 : vector<1x768xf32> to vector<32x768xf32>
    %40 = arith.addf %37, %39 : vector<32x768xf32>
    %41 = arith.truncf %40 : vector<32x768xf32> to vector<32x768xbf16>
    %42 = vector.extract_strided_slice %41 {offsets = [0, 0], sizes = [32, 256], strides = [1, 1]} : vector<32x768xbf16> to vector<32x256xbf16>
    %43 = vector.extract_strided_slice %41 {offsets = [0, 256], sizes = [32, 512], strides = [1, 1]} : vector<32x768xbf16> to vector<32x512xbf16>
    %c128 = arith.constant 128 : index
    %c0_22 = arith.constant 0 : index
    %44 = vector.load %arg4[%c128, %c0_22] : memref<944x768xbf16, #tpu.memory_space<vmem>>, vector<8x256xbf16>
    %c144 = arith.constant 144 : index
    %c0_23 = arith.constant 0 : index
    %45 = vector.load %arg4[%c144, %c0_23] : memref<944x768xbf16, #tpu.memory_space<vmem>>, vector<256x32xbf16>
    %c80 = arith.constant 80 : index
    %c0_24 = arith.constant 0 : index
    %46 = vector.load %arg4[%c80, %c0_24] : memref<944x768xbf16, #tpu.memory_space<vmem>>, vector<8x32xbf16>
    %c16_25 = arith.constant 16 : index
    %c0_26 = arith.constant 0 : index
    %47 = vector.load %arg5[%c16_25, %c0_26] : memref<96x768xf32, #tpu.memory_space<vmem>>, vector<1x32xf32>
    %cst_27 = arith.constant dense<0.000000e+00> : vector<32x8xf32>
    %48 = tpu.matmul %11, %1, %cst_27 {dimension_numbers = #tpu.dot_dimension_numbers<[1], [0], [0], [1], [0, 0, 1, 1], [], []>} : vector<32x16xbf16>, vector<16x8xbf16>, vector<32x8xf32> -> vector<32x8xf32>
    %49 = arith.truncf %48 : vector<32x8xf32> to vector<32x8xbf16>
    %cst_28 = arith.constant dense<0.000000e+00> : vector<32x256xf32>
    %50 = tpu.matmul %49, %44, %cst_28 {dimension_numbers = #tpu.dot_dimension_numbers<[1], [0], [0], [1], [0, 0, 1, 1], [], []>} : vector<32x8xbf16>, vector<8x256xbf16>, vector<32x256xf32> -> vector<32x256xf32>
    %51 = arith.truncf %50 : vector<32x256xf32> to vector<32x256xbf16>
    %52 = arith.mulf %51, %42 : vector<32x256xbf16>
    %cst_29 = arith.constant dense<0.000000e+00> : vector<32x32xf32>
    %53 = tpu.matmul %52, %45, %cst_29 {dimension_numbers = #tpu.dot_dimension_numbers<[1], [0], [0], [1], [0, 0, 1, 1], [], []>} : vector<32x256xbf16>, vector<256x32xbf16>, vector<32x32xf32> -> vector<32x32xf32>
    %54 = arith.truncf %53 : vector<32x32xf32> to vector<32x32xbf16>
    %cst_30 = arith.constant dense<0.000000e+00> : vector<16x32xf32>
    %55 = tpu.matmul %19, %54, %cst_30 {dimension_numbers = #tpu.dot_dimension_numbers<[1], [0], [0], [1], [0, 0, 1, 1], [], []>} : vector<16x32xbf16>, vector<32x32xbf16>, vector<16x32xf32> -> vector<16x32xf32>
    %cst_31 = arith.constant dense<0.000000e+00> : vector<16x32xf32>
    %56 = tpu.matmul %1, %46, %cst_31 {dimension_numbers = #tpu.dot_dimension_numbers<[1], [0], [0], [1], [0, 0, 1, 1], [], []>} : vector<16x8xbf16>, vector<8x32xbf16>, vector<16x32xf32> -> vector<16x32xf32>
    %57 = arith.addf %55, %56 : vector<16x32xf32>
    %58 = vector.broadcast %47 : vector<1x32xf32> to vector<16x32xf32>
    %59 = arith.addf %57, %58 : vector<16x32xf32>
    %cst_32 = arith.constant 0.000000e+00 : f32
    %60 = vector.broadcast %cst_32 : f32 to vector<16x32xf32>
    %61 = arith.maximumf %59, %60 : vector<16x32xf32>
    %62 = arith.truncf %61 : vector<16x32xf32> to vector<16x32xbf16>
    %c400 = arith.constant 400 : index
    %c0_33 = arith.constant 0 : index
    %63 = vector.load %arg4[%c400, %c0_33] : memref<944x768xbf16, #tpu.memory_space<vmem>>, vector<32x512xbf16>
    %c432 = arith.constant 432 : index
    %c0_34 = arith.constant 0 : index
    %64 = vector.load %arg4[%c432, %c0_34] : memref<944x768xbf16, #tpu.memory_space<vmem>>, vector<512x16xbf16>
    %c96 = arith.constant 96 : index
    %c0_35 = arith.constant 0 : index
    %65 = vector.load %arg4[%c96, %c0_35] : memref<944x768xbf16, #tpu.memory_space<vmem>>, vector<32x16xbf16>
    %c24 = arith.constant 24 : index
    %c0_36 = arith.constant 0 : index
    %66 = vector.load %arg5[%c24, %c0_36] : memref<96x768xf32, #tpu.memory_space<vmem>>, vector<1x16xf32>
    %cst_37 = arith.constant dense<0.000000e+00> : vector<32x32xf32>
    %67 = tpu.matmul %11, %62, %cst_37 {dimension_numbers = #tpu.dot_dimension_numbers<[1], [0], [0], [1], [0, 0, 1, 1], [], []>} : vector<32x16xbf16>, vector<16x32xbf16>, vector<32x32xf32> -> vector<32x32xf32>
    %68 = arith.truncf %67 : vector<32x32xf32> to vector<32x32xbf16>
    %cst_38 = arith.constant dense<0.000000e+00> : vector<32x512xf32>
    %69 = tpu.matmul %68, %63, %cst_38 {dimension_numbers = #tpu.dot_dimension_numbers<[1], [0], [0], [1], [0, 0, 1, 1], [], []>} : vector<32x32xbf16>, vector<32x512xbf16>, vector<32x512xf32> -> vector<32x512xf32>
    %70 = arith.truncf %69 : vector<32x512xf32> to vector<32x512xbf16>
    %71 = arith.mulf %70, %43 : vector<32x512xbf16>
    %cst_39 = arith.constant dense<0.000000e+00> : vector<32x16xf32>
    %72 = tpu.matmul %71, %64, %cst_39 {dimension_numbers = #tpu.dot_dimension_numbers<[1], [0], [0], [1], [0, 0, 1, 1], [], []>} : vector<32x512xbf16>, vector<512x16xbf16>, vector<32x16xf32> -> vector<32x16xf32>
    %73 = arith.truncf %72 : vector<32x16xf32> to vector<32x16xbf16>
    %cst_40 = arith.constant dense<0.000000e+00> : vector<16x16xf32>
    %74 = tpu.matmul %19, %73, %cst_40 {dimension_numbers = #tpu.dot_dimension_numbers<[1], [0], [0], [1], [0, 0, 1, 1], [], []>} : vector<16x32xbf16>, vector<32x16xbf16>, vector<16x16xf32> -> vector<16x16xf32>
    %cst_41 = arith.constant dense<0.000000e+00> : vector<16x16xf32>
    %75 = tpu.matmul %62, %65, %cst_41 {dimension_numbers = #tpu.dot_dimension_numbers<[1], [0], [0], [1], [0, 0, 1, 1], [], []>} : vector<16x32xbf16>, vector<32x16xbf16>, vector<16x16xf32> -> vector<16x16xf32>
    %76 = arith.addf %74, %75 : vector<16x16xf32>
    %77 = vector.broadcast %66 : vector<1x16xf32> to vector<16x16xf32>
    %78 = arith.addf %76, %77 : vector<16x16xf32>
    %cst_42 = arith.constant 0.000000e+00 : f32
    %79 = vector.broadcast %cst_42 : f32 to vector<16x16xf32>
    %80 = arith.maximumf %78, %79 : vector<16x16xf32>
    %81 = arith.truncf %80 : vector<16x16xf32> to vector<16x16xbf16>
    %cst_43 = arith.constant dense<0.000000e+00> : vector<2x16xf32>
    %82 = tpu.matmul %27, %81, %cst_43 {dimension_numbers = #tpu.dot_dimension_numbers<[1], [0], [0], [1], [0, 0, 1, 1], [], []>} : vector<2x16xbf16>, vector<16x16xbf16>, vector<2x16xf32> -> vector<2x16xf32>
    %c48 = arith.constant 48 : index
    %c0_44 = arith.constant 0 : index
    %83 = vector.load %arg5[%c48, %c0_44] : memref<96x768xf32, #tpu.memory_space<vmem>>, vector<16x32xf32>
    %cst_45 = arith.constant dense<0.000000e+00> : vector<2x32xf32>
    %84 = tpu.matmul %82, %83, %cst_45 {dimension_numbers = #tpu.dot_dimension_numbers<[1], [0], [0], [1], [0, 0, 1, 1], [], []>} : vector<2x16xf32>, vector<16x32xf32>, vector<2x32xf32> -> vector<2x32xf32>
    %c32 = arith.constant 32 : index
    %c0_46 = arith.constant 0 : index
    %85 = vector.load %arg5[%c32, %c0_46] : memref<96x768xf32, #tpu.memory_space<vmem>>, vector<1x32xf32>
    %86 = vector.broadcast %85 : vector<1x32xf32> to vector<2x32xf32>
    %87 = arith.addf %84, %86 : vector<2x32xf32>
    %cst_47 = arith.constant 0.000000e+00 : f32
    %88 = vector.broadcast %cst_47 : f32 to vector<2x32xf32>
    %89 = arith.maximumf %87, %88 : vector<2x32xf32>
    %c64 = arith.constant 64 : index
    %c0_48 = arith.constant 0 : index
    %90 = vector.load %arg5[%c64, %c0_48] : memref<96x768xf32, #tpu.memory_space<vmem>>, vector<32x1xf32>
    %cst_49 = arith.constant dense<0.000000e+00> : vector<2x1xf32>
    %91 = tpu.matmul %89, %90, %cst_49 {dimension_numbers = #tpu.dot_dimension_numbers<[1], [0], [0], [1], [0, 0, 1, 1], [], []>} : vector<2x32xf32>, vector<32x1xf32>, vector<2x1xf32> -> vector<2x1xf32>
    %c40 = arith.constant 40 : index
    %c0_50 = arith.constant 0 : index
    %92 = vector.load %arg5[%c40, %c0_50] : memref<96x768xf32, #tpu.memory_space<vmem>>, vector<1x1xf32>
    %93 = vector.broadcast %92 : vector<1x1xf32> to vector<2x1xf32>
    %94 = arith.addf %91, %93 : vector<2x1xf32>
    %c0_51 = arith.constant 0 : index
    %c0_52 = arith.constant 0 : index
    %95 = vector.load %arg6[%c0_51, %c0_52] : memref<2x1xf32, #tpu.memory_space<vmem>>, vector<2x1xf32>
    tpu.vector_store %arg6[%c0_51, %c0_52], %94 {strides = array<i32>} : memref<2x1xf32, #tpu.memory_space<vmem>>, vector<2x1xf32>,
    return
  }
}

</mosaic_0001>

<bundles_post_ra>
// kernel: example_net_forward.1
= control target key start
LH: loop header
LB: loop body
LE: loop exit
PB: predicated region body
PF: predicated region fallthrough
CT: control target
= control target key end

     0   :  { %11 = vsyncpa [#allocation3], 0  ;;  %s2610_s0 = inlined_call_operand.vmem [shape: f32[16,8], index: 0, kind: input, shape index: {}]   ;;  %s2611_s1 = inlined_call_operand.vmem [shape: f32[32,4], index: 1, kind: input, shape index: {}]   ;;  %s2612_s2 = inlined_call_operand.vmem [shape: s32[32,1], index: 2, kind: input, shape index: {}]   ;;  %s2613_s3 = inlined_call_operand.vmem [shape: s32[2,32], index: 3, kind: input, shape index: {}]   ;;  %s2614_s4 = inlined_call_operand.hbm [shape: bf16[944,768], index: 4, kind: input, shape index: {}]   ;;  %s2615_s5 = inlined_call_operand.hbm [shape: f32[96,768], index: 5, kind: input, shape index: {}]   ;;  %s2616_s6 = inlined_call_operand.vmem [shape: f32[2,1], index: 6, kind: output, shape index: {}]  }
   0x1   :  { %12 = vsyncpa [#allocation5], 0  ;;  %s2302_s21 = smov [#allocation2]  }
   0x2   :  { %s26_s22 = sshll.u32 %s2302_s21, 4  ;;  %s27_s22 = int_to_ptr.vmem [resolvable:$true] %s26_s22 }
   0x3   :  { %s2266_s23 = scalar_lea.vmem %s27_s22, 45312  ;;  %p2271_p1 = scmp.lt.s32.totalorder %s27_s22, %s27_s22 }
   0x4   :  { %p2267_p0 = scmp.ne.s32.totalorder %s27_s22, %s2266_s23  ;;  %p2272_p2 = scmp.lt.s32.totalorder %s2266_s23, %s2266_s23 }
   0x6   :  { %p2273_p3 = por %p2272_p2, %p2271_p1 }
   0x8   :  { %p2274_p4 = pnand %p2273_p3, %p2267_p0 }
   0xa   :  { %2277 = shalt.err (!%p2274_p4)
}
   0xb   :  { %s2303_s24 = smov 384   ;;  %s2304_s25 = smov 24  }
   0xc   :  { %32 = dma.hbm_to_vmem [thread:$0]  %s2614_s4, 45312, %s27_s22, [#allocation3], %s2303_s24, %s2303_s24, %s2304_s25  }
   0xd   :  { %s2305_s28 = smov [#allocation4]  }
   0xe   :  { %s38_s29 = sshll.u32 %s2305_s28, 4  ;;  %s39_s29 = int_to_ptr.vmem [resolvable:$true] %s38_s29 }
   0xf   :  { %s2286_s30 = scalar_lea.vmem %s39_s29, 9216  ;;  %p2291_p6 = scmp.lt.s32.totalorder %s39_s29, %s39_s29 }
  0x10   :  { %p2287_p5 = scmp.ne.s32.totalorder %s39_s29, %s2286_s30  ;;  %p2292_p7 = scmp.lt.s32.totalorder %s2286_s30, %s2286_s30 }
  0x12   :  { %p2293_p8 = por %p2292_p7, %p2291_p6 }
  0x14   :  { %p2294_p9 = pnand %p2293_p8, %p2287_p5 }
  0x16   :  { %2297 = shalt.err (!%p2294_p9)
}
  0x17   :  { %s2306_s7 = smov 768   ;;  %s2307_s8 = smov 48  }
  0x18   :  { %44 = dma.hbm_to_vmem [thread:$0]  %s2615_s5, 9216, %s39_s29, [#allocation5], %s2306_s7, %s2306_s7, %s2307_s8  }
  0x19   :  { %2298 = dma.done.wait [#allocation3], 45312  }
  0x1a   :  { %2299 = vsyncadd [#allocation3], 4294921984 }
  0x1b   :  { %2300 = dma.done.wait [#allocation5], 9216  }
  0x1c   :  { %2301 = vsyncadd [#allocation5], 4294958080  ;;  %v2308_v0 = vmov 0   ;;  %vm119_vm0 = vcmask 1041408   ;;  %v110_v1 = vld [vmem:[#allocation2] sm:$0x3]  ;;  %v65_v38 = vlaneseq }
  0x1d   :  { %2156 = vset.pattern.permute.xlu0 %v2308_v0  ;;  %2157 = vset.pattern.permute.xlu1 %v2308_v0  ;;  %v55_v2 = vld [vmem:[%s2611_s1] sm:$0xff]  ;;  %v56_v3 = vld [vmem:[%s2611_s1 + $0x8] sm:$0xff]  ;;  %vm112_vm1 = vcmask 31744   ;;  %v121_v4 = vsel %vm119_vm0, %v110_v1, 0  ;;  %v57_v6 = vld [vmem:[%s2611_s1 + $0x10] sm:$0xff]  ;;  %vm357_vm2 = vcmask 523264  }
  0x1e   :  { %396 = vmatprep.mubr.bf16.mxu1 %v2308_v0  ;;  %2146 = vmatprep.subr.msk.bf16.mxu0 %vm119_vm0, %v110_v1  ;;  %v59_v5 = vpack.c.bf16 %v56_v3, %v55_v2  ;;  %v58_v7 = vld [vmem:[%s2611_s1 + $0x18] sm:$0xff]  ;;  %v61_v8 = vld [vmem:[%s2612_s2] sm:$0xff]  ;;  %v63_v10 = vld [vmem:[%s2612_s2 + $0x10] sm:$0xff]  ;;  %v66_v42 = vand.u32 127, %v65_v38  ;;  %v2309_v54 = vmov 0.0   ;;  %vm570_vm5 = vcmask 130048  }
  0x1f   :  { %2075 = vmatpush3.bf16.msra.mxu0 %v121_v4  ;;  %v60_v9 = vpack.c.bf16 %v58_v7, %v57_v6  ;;  %68 = vperm.xlu0 %2156, %v61_v8   ;;  %v62_v11 = vld [vmem:[%s2612_s2 + $0x8] sm:$0xff]  ;;  %v64_v12 = vld [vmem:[%s2612_s2 + $0x18] sm:$0xff]  ;;  %v52_v30 = vld [vmem:[%s2610_s0] sm:$0xff]  ;;  %vm640_vm8 = vcmask 1043456   ;;  %vm633_vm9 = vcmask 64512   ;;  %vm2310_vm10 = vmmov 0  }
  0x20   :  { %2076 = vmatprep.mubr.msk.bf16.mxu0 %vm112_vm1, %v59_v5  ;;  %74 = vperm.xlu1 %2157, %v63_v10   ;;  %v2158_v13 = vld [vmem:[#allocation2 + $0xc4] ss:$24 sps:$4 sm:$0xff]   ;;  %v2160_v14 = vld [vmem:[#allocation2 + $0xc8] ss:$24 sps:$4 sm:$0xff]   ;;  %v2164_v17 = vld [vmem:[#allocation2 + $0x94] ss:$24 sps:$4 sm:$0xff]  }
  0x21   :  { %372 = vmatprep.subr.bf16.mxu1 %v2158_v13  ;;  %v2162_v15 = vld [vmem:[#allocation2 + $0xcc] ss:$24 sps:$4 sm:$0xff]   ;;  %v2163_v16 = vld [vmem:[#allocation2 + $0xc0] ss:$24 sps:$4 sm:$0xff]   ;;  %v2168_v18 = vld [vmem:[#allocation2 + $0x9c] ss:$24 sps:$4 sm:$0xff]  }
  0x22   :  { %2077 = vmatmul.mubr.msk.bf16.vlgmr.msra.gmra.mxu0 %vm112_vm1, %v60_v9  ;;  %425 = vmatprep.subr.bf16.mxu0 %v2162_v15  ;;  %v2166_v19 = vld [vmem:[#allocation2 + $0x98] ss:$24 sps:$4 sm:$0xff]   ;;  %v2170_v21 = vld [vmem:[#allocation2 + $0x64] ss:$24 sps:$4 sm:$0xff]   ;;  %v2172_v23 = vld [vmem:[#allocation2 + $0x68] ss:$24 sps:$4 sm:$0xff]  }
  0x23   :  { %71 = vperm.xlu0 %2156, %v62_v11   ;;  %449 = vmatprep.mubr.bf16.mxu0 %v2308_v0  ;;  %v2169_v20 = vld [vmem:[#allocation2 + $0x90] ss:$24 sps:$4 sm:$0xff]   ;;  %v2174_v22 = vld [vmem:[#allocation2 + $0x6c] ss:$24 sps:$4 sm:$0xff]   ;;  %v2175_v24 = vld [vmem:[#allocation2 + $0x60] ss:$24 sps:$4 sm:$0xff]  }
  0x24   :  { %77 = vperm.xlu1 %2157, %v64_v12   ;;  %373 = vmatpush1.bf16.msra.mxu1 %v2163_v16  ;;  %v2176_v25 = vld [vmem:[#allocation2 + $0x34] ss:$24 sps:$4 sm:$0xff]   ;;  %v2178_v27 = vld [vmem:[#allocation2 + $0x38] ss:$24 sps:$4 sm:$0xff]   ;;  %v2187_v49 = vld [vmem:[#allocation2 + $0xa4] ss:$24 sps:$4 sm:$0xff]  }
  0x25   :  { %426 = vmatpush1.bf16.msra.mxu0 %v2160_v14  ;;  %374 = vmatprep.subr.bf16.mxu1 %v2164_v17  ;;  %v2180_v26 = vld [vmem:[#allocation2 + $0x3c] ss:$24 sps:$4 sm:$0xff]   ;;  %v2181_v28 = vld [vmem:[#allocation2 + $0x30] ss:$24 sps:$4 sm:$0xff]   ;;  %v2185_v52 = vld [vmem:[#allocation2 + $0xa0] ss:$24 sps:$4 sm:$0xff]  }
  0x26   :  { %427 = vmatprep.subr.bf16.mxu0 %v2168_v18  ;;  %v2184_v29 = vld [vmem:[#allocation2 + $0xd4] ss:$24 sps:$4 sm:$0xff]   ;;  %v111_v36 = vld [vmem:[#allocation4] ss:$0 sm:$0xff]  ;;  %v2193_v63 = vld [vmem:[#allocation2 + $0x44] ss:$24 sps:$4 sm:$0xff]  }
  0x27   :  { %v53_v31 = vld [vmem:[%s2610_s0 + $0x8] sm:$0xff]  ;;  %v2191_v1 = vld [vmem:[#allocation2 + $0x40] ss:$24 sps:$4 sm:$0xff]   ;;  %vm902_vm13 = vcmask 261120   ;;  %vm1840_vm15 = vcmask 1024  }
  0x28   :  { %375 = vmatpush1.bf16.msra.mxu1 %v2169_v20  ;;  %v2388_v32 = vpack.c.bf16 %v53_v31, %v52_v30  ;;  %v2182_v46 = vld [vmem:[#allocation2 + $0xd0] ss:$24 sps:$4 sm:$0xff]   ;;  %v2190_v57 = vld [vmem:[#allocation2 + $0x74] ss:$24 sps:$4 sm:$0xff]   ;;  %v535_v5 = vld [vmem:[#allocation2 + $0x180] sm:$0xff] }
  0x29   :  { %428 = vmatpush1.bf16.msra.mxu0 %v2166_v19  ;;  %376 = vmatprep.subr.bf16.mxu1 %v2170_v21  ;;  %v2188_v61 = vld [vmem:[#allocation2 + $0x70] ss:$24 sps:$4 sm:$0xff]   ;;  %v1885_v6 = vcombine.high %v535_v5, %v535_v5  ;;  %v1884_v7 = vcombine.low %v535_v5, %v535_v5  ;;  %v2196_v9 = vld [vmem:[#allocation2 + $0x480] ss:$24 sps:$4 sm:$0xff]   ;;  %v2420_v19 = vshrl.u32 %v65_v38, 7 }
  0x2a   :  { %429 = vmatprep.subr.bf16.mxu0 %v2174_v22  ;;  %v2197_v10 = vld [vmem:[#allocation2 + $0x300] ss:$24 sps:$4 sm:$0xff]   ;;  %v2198_v11 = vld [vmem:[#allocation2 + $0x450] ss:$24 sps:$4 sm:$0xff]  }
  0x2b   :  { %v642_v8 = vsel %vm640_vm8, %v1884_v7, 0  ;;  %v2199_v12 = vld [vmem:[#allocation2 + $0x2d0] ss:$24 sps:$4 sm:$0xff]   ;;  %v2200_v13 = vld [vmem:[#allocation2 + $0x420] ss:$24 sps:$4 sm:$0xff]  }
  0x2c   :  { %377 = vmatpush1.bf16.msra.mxu1 %v2175_v24  ;;  %v2201_v14 = vld [vmem:[#allocation2 + $0x2a0] ss:$24 sps:$4 sm:$0xff]   ;;  %v2202_v15 = vld [vmem:[#allocation2 + $0x3f0] ss:$24 sps:$4 sm:$0xff]   ;;  %v221_v24 = vsub.s32 3, %v2420_v19 }
  0x2d   :  { %430 = vmatpush1.bf16.msra.mxu0 %v2172_v23  ;;  %378 = vmatprep.subr.bf16.mxu1 %v2176_v25  ;;  %v2203_v16 = vld [vmem:[#allocation2 + $0x270] ss:$24 sps:$4 sm:$0xff]   ;;  %v2204_v17 = vld [vmem:[#allocation2 + $0x3c0] ss:$24 sps:$4 sm:$0xff]   ;;  %v217_v23 = vsub.s32 2, %v2420_v19 }
  0x2e   :  { %431 = vmatprep.subr.bf16.mxu0 %v2180_v26  ;;  %v2205_v18 = vld [vmem:[#allocation2 + $0x240] ss:$24 sps:$4 sm:$0xff]  }
  0x2f   :  { %v203_v20 = vld [vmem:[#allocation4 + $0x30] ss:$8 sm:$0xf] }
  0x30   :  { %379 = vmatpush1.bf16.msra.mxu1 %v2181_v28  ;;  %v204_v21 = vld [vmem:[#allocation4 + $0x30] ss:$8 sm:$0x30] }
  0x31   :  { %432 = vmatpush1.bf16.msra.mxu0 %v2178_v27  ;;  %478 = vmatprep.subr.bf16.mxu1 %v2184_v29  ;;  %v2422_v22 = vor.u32 %v204_v21, %v203_v20 }
  0x32   :  { %2080 = vmatprep.subr.bf16.mxu0 %v2388_v32 }
  0x33   :  { %v218_v27 = vrot.slane %v2422_v22, %v217_v23  ;;  %v222_v30 = vrot.slane %v2422_v22, %v221_v24  ;;  %v2206_v24 = vld [vmem:[#allocation2 + $0x390] ss:$24 sps:$4 sm:$0xff]  }
  0x9a   :  { %v69_v35 = vpop.permute.xlu0 %68 }
  0x9b   :  { %vm79_vm3 = vcmp.eq.s32.totalorder %v69_v35, %v66_v42  ;;  %v75_v50 = vpop.permute.xlu1 %74 }
  0x9c   :  { %v83_v55 = vsel %vm79_vm3, 1.0, %v2309_v54  ;;  %vm81_vm6 = vcmp.eq.s32.totalorder %v75_v50, %v66_v42  ;;  %v225_v50 = vsub.s32 4, %v2420_v19 }
  0x9d   :  { %v85_v2 = vsel %vm81_vm6, 1.0, %v2309_v54 }
  0x9e   :  { %v72_v45 = vpop.permute.xlu0 %71 }
  0x9f   :  { %vm80_vm4 = vcmp.eq.s32.totalorder %v72_v45, %v66_v42  ;;  %v78_v60 = vpop.permute.xlu1 %77 }
  0xa0   :  { %v84_v56 = vsel %vm80_vm4, 1.0, %v2309_v54  ;;  %vm82_vm7 = vcmp.eq.s32.totalorder %v78_v60, %v66_v42 }
  0xa1   :  { %v2399_v59 = vpack.c.bf16 %v84_v56, %v83_v55  ;;  %v86_v3 = vsel %vm82_vm7, 1.0, %v2309_v54 }
  0xa2   :  { %v2408_v4 = vpack.c.bf16 %v86_v3, %v85_v2 }
  0xe2   :  { %v2078_v33 = vpop.f32.mrf.mxu0 }
  0xe3   :  { %v166_v51 = vadd.f32 %v2078_v33, %v111_v36 }
  0xe4   :  { %v157_v34 = vpop.f32.mrf.mxu0 }
  0xe5   :  { %v158_v39 = vadd.f32 %v157_v34, %v111_v36  ;;  %v174_v58 = vmax.f32 %v166_v51, 0.0 }
  0xe6   :  { %v2079_v37 = vpop.f32.mrf.mxu0 }
  0xe7   :  { %v172_v43 = vmax.f32 %v158_v39, 0.0  ;;  %v169_v47 = vadd.f32 %v2079_v37, %v111_v36 }
  0xe8   :  { %v160_v40 = vpop.f32.mrf.mxu0 }
  0xe9   :  { %v161_v41 = vadd.f32 %v160_v40, %v111_v36  ;;  %v175_v53 = vmax.f32 %v169_v47, 0.0 }
  0xeb   :  { %v173_v44 = vmax.f32 %v161_v41, 0.0  ;;  %v177_v62 = vpack.c.bf16 %v175_v53, %v174_v58 }
  0xed   :  { %v176_v48 = vpack.c.bf16 %v173_v44, %v172_v43 }
  0xef   :  { %1876 = vmatmul.mubr.msk.bf16.vlgmr.msra.gmra.mxu1 %vm357_vm2, %v176_v48  ;;  %1878 = vmatmul.mubr.msk.bf16.vlgmr.msra.gmra.mxu0 %vm357_vm2, %v176_v48 }
  0xf0   :  { %479 = vmatpush1.bf16.msra.mxu1 %v2182_v46  ;;  %406 = vmatprep.mubr.bf16.mxu1 %v2308_v0 }
  0xf1   :  { %480 = vmatprep.subr.bf16.mxu1 %v2187_v49  ;;  %459 = vmatprep.mubr.bf16.mxu0 %v2308_v0 }
  0xf2   :  { %2081 = vmatpush3.bf16.msra.mxu0 %v2388_v32 }
  0xf3   :  { %1886 = vmatprep.subr.msk.bf16.mxu0 %vm640_vm8, %v1885_v6 }
  0xf4   :  { %481 = vmatpush1.bf16.msra.mxu1 %v2185_v52 }
  0xf5   :  { %482 = vmatprep.subr.bf16.mxu1 %v2190_v57  ;;  %v229_v57 = vsub.s32 5, %v2420_v19 }
  0xf7   :  { %1877 = vmatmul.mubr.msk.bf16.gmra.mxu1 %vm357_vm2, %v177_v62  ;;  %1879 = vmatmul.mubr.msk.bf16.gmra.mxu0 %vm357_vm2, %v177_v62  ;;  %v2472_v2 = vrot.slane %v2422_v22, %v229_v57 }
  0xf8   :  { %483 = vmatpush1.bf16.msra.mxu1 %v2188_v61  ;;  %2082 = vmatprep.mubr.msk.bf16.mxu0 %vm570_vm5, %v2399_v59 }
  0xf9   :  { %484 = vmatprep.subr.bf16.mxu1 %v2193_v63  ;;  %502 = vmatprep.mubr.bf16.mxu1 %v2308_v0 }
  0xfc   :  { %485 = vmatpush1.bf16.msra.mxu1 %v2191_v1 }
  0xfd   :  { %1966 = vmatprep.subr.bf16.mxu1 %v2196_v9 }
  0xff   :  { %1880 = vmatmul.mubr.msk.bf16.vlgmr.msra.gmra.mxu1 %vm357_vm2, %v176_v48  ;;  %2083 = vmatmul.mubr.msk.bf16.vlgmr.msra.gmra.mxu0 %vm570_vm5, %v2408_v4 }
 0x100   :  { %512 = vmatprep.mubr.bf16.mxu1 %v2308_v0  ;;  %679 = vmatprep.mubr.bf16.mxu0 %v2308_v0 }
 0x101   :  { %662 = vmatpush1.bf16.msra.mxu0 %v642_v8  ;;  %1967 = vmatpush3.bf16.msra.mxu1 %v2197_v10 }
 0x102   :  { %2086 = vmatprep.subr.bf16.mxu0 %v2309_v54  ;;  %1968 = vmatprep.subr.bf16.mxu1 %v2198_v11 }
 0x105   :  { %1969 = vmatpush3.bf16.msra.mxu1 %v2199_v12 }
 0x106   :  { %1970 = vmatprep.subr.bf16.mxu1 %v2200_v13 }
 0x107   :  { %1881 = vmatmul.mubr.msk.bf16.gmra.mxu1 %vm357_vm2, %v177_v62  ;;  %v226_v62 = vrot.slane %v2422_v22, %v225_v50 }
 0x109   :  { %1971 = vmatpush3.bf16.msra.mxu1 %v2201_v14 }
 0x10a   :  { %1972 = vmatprep.subr.bf16.mxu1 %v2202_v15 }
 0x10d   :  { %1973 = vmatpush3.bf16.msra.mxu1 %v2203_v16 }
 0x10e   :  { %1974 = vmatprep.subr.bf16.mxu1 %v2204_v17 }
 0x111   :  { %1975 = vmatpush3.bf16.msra.mxu1 %v2205_v18 }
 0x112   :  { %1976 = vmatprep.subr.bf16.mxu1 %v2206_v24 }
 0x1af   :  { %v2426_v25 = vpop.f32.mrf.mxu1  ;;  %v451_v26 = vpop.f32.mrf.mxu0 }
 0x1b0   :  { %v2434_v34 = vadd.f32 %v451_v26, %v218_v27  ;;  %v2207_v26 = vld [vmem:[#allocation2 + $0x210] ss:$24 sps:$4 sm:$0xff]  }
 0x1b1   :  { %v2429_v28 = vpop.f32.mrf.mxu1  ;;  %v453_v29 = vpop.f32.mrf.mxu0  ;;  %1977 = vmatpush3.bf16.msra.mxu1 %v2207_v26 }
 0x1b2   :  { %v2440_v38 = vadd.f32 %v453_v29, %v222_v30  ;;  %v2209_v29 = vld [vmem:[#allocation2 + $0x1e0] ss:$24 sps:$4 sm:$0xff]  }
 0x1b3   :  { %v2432_v31 = vpop.f32.mrf.mxu1  ;;  %v455_v33 = vpop.f32.mrf.mxu0 }
 0x1b4   :  { %v2436_v35 = vadd.f32 %v455_v33, %v218_v27  ;;  %v2211_v33 = vld [vmem:[#allocation2 + $0x1b0] ss:$24 sps:$4 sm:$0xff]  }
 0x1b5   :  { %v2438_v36 = vpop.f32.mrf.mxu1  ;;  %v457_v37 = vpop.f32.mrf.mxu0 }
 0x1b6   :  { %v525_v39 = vpack.c.bf16 %v2436_v35, %v2434_v34  ;;  %v2444_v40 = vadd.f32 %v457_v37, %v222_v30  ;;  %v213_v37 = vsub.s32 1, %v2420_v19  ;;  %v2257_v34 = vld [vmem:[#allocation2 + $0x120] ss:$24 sps:$4 sm:$0xff]  }
 0x1b7   :  { %v2446_v41 = vpop.f32.mrf.mxu1  ;;  %v461_v42 = vpop.f32.mrf.mxu0 }
 0x1b8   :  { %v526_v43 = vpack.c.bf16 %v2444_v40, %v2440_v38  ;;  %v2454_v48 = vadd.f32 %v461_v42, %v218_v27  ;;  %v209_v42 = vsub.s32 0, %v2420_v19 }
 0x1b9   :  { %v2450_v44 = vpop.f32.mrf.mxu1  ;;  %v463_v45 = vpop.f32.mrf.mxu0 }
 0x1ba   :  { %v2461_v53 = vadd.f32 %v463_v45, %v222_v30  ;;  %v210_v50 = vrot.slane %v2422_v22, %v209_v42 }
 0x1bb   :  { %v2452_v46 = vpop.f32.mrf.mxu1  ;;  %v465_v47 = vpop.f32.mrf.mxu0 }
 0x1bc   :  { %v2456_v49 = vadd.f32 %v465_v47, %v218_v27  ;;  %v2208_v27 = vld [vmem:[#allocation2 + $0x360] ss:$24 sps:$4 sm:$0xff]   ;;  %v214_v47 = vrot.slane %v2422_v22, %v213_v37 }
 0x1bd   :  { %v2459_v51 = vpop.f32.mrf.mxu1  ;;  %v467_v52 = vpop.f32.mrf.mxu0  ;;  %1978 = vmatprep.subr.bf16.mxu1 %v2208_v27 }
 0x1be   :  { %v531_v55 = vpack.c.bf16 %v2456_v49, %v2454_v48  ;;  %v2465_v56 = vadd.f32 %v467_v52, %v222_v30  ;;  %1979 = vmatpush3.bf16.msra.mxu1 %v2209_v29  ;;  %v2210_v30 = vld [vmem:[#allocation2 + $0x330] ss:$24 sps:$4 sm:$0xff]   ;;  %v405_v57 = vadd.f32 %v2438_v36, %v214_v47  ;;  %v415_v22 = vadd.f32 %v2459_v51, %v214_v47 }
 0x1bf   :  { %v504_v58 = vpop.f32.mrf.mxu1  ;;  %v2084_v60 = vpop.f32.mrf.mxu0  ;;  %1980 = vmatprep.subr.bf16.mxu1 %v2210_v30  ;;  %v413_v36 = vadd.f32 %v2452_v46, %v210_v50  ;;  %v568_v51 = vld [vmem:[#allocation2 + $0xf0] sm:$0xf] }
 0x1c0   :  { %v532_v61 = vpack.c.bf16 %v2465_v56, %v2461_v53  ;;  %v2474_v6 = vadd.f32 %v504_v58, %v226_v62  ;;  %v403_v58 = vadd.f32 %v2432_v31, %v210_v50  ;;  %v859_v46 = vsel %vm640_vm8, %v568_v51, 0 }
 0x1c1   :  { %v506_v63 = vpop.f32.mrf.mxu1  ;;  %v611_v1 = vpop.f32.mrf.mxu0 }
 0x1c2   :  { %v2479_v10 = vadd.f32 %v506_v63, %v2472_v2  ;;  %1981 = vmatpush3.bf16.msra.mxu1 %v2211_v33  ;;  %v399_v63 = vadd.f32 %v2426_v25, %v210_v50  ;;  %v409_v25 = vadd.f32 %v2446_v41, %v210_v50 }
 0x1c3   :  { %v508_v3 = vpop.f32.mrf.mxu1  ;;  %v2085_v5 = vpop.f32.mrf.mxu0 }
 0x1c4   :  { %v2476_v7 = vadd.f32 %v508_v3, %v226_v62  ;;  %v627_v21 = vpack.c.bf16 %v2085_v5, %v2084_v60  ;;  %v529_v30 = vpack.c.bf16 %v413_v36, %v409_v25  ;;  %v569_v25 = vld [vmem:[#allocation4 + $0x60] ss:$0 sm:$0xff] }
 0x1c5   :  { %v510_v8 = vpop.f32.mrf.mxu1  ;;  %v614_v9 = vpop.f32.mrf.mxu0 }
 0x1c6   :  { %v527_v11 = vpack.c.bf16 %v2476_v7, %v2474_v6  ;;  %v2484_v12 = vadd.f32 %v510_v8, %v2472_v2  ;;  %v626_v13 = vpack.c.bf16 %v614_v9, %v611_v1  ;;  %v523_v9 = vpack.c.bf16 %v403_v58, %v399_v63 }
 0x1c7   :  { %v514_v14 = vpop.f32.mrf.mxu1  ;;  %v92_v58 = vadd.s32 8, %v2420_v19 }
 0x1c8   :  { %v528_v15 = vpack.c.bf16 %v2484_v12, %v2479_v10  ;;  %1887 = vmatmul.mubr.msk.bf16.vlgmr.msra.gmra.mxu0 %vm633_vm9, %v626_v13  ;;  %v2492_v18 = vadd.f32 %v514_v14, %v226_v62 }
 0x1c9   :  { %v2489_v16 = vpop.f32.mrf.mxu1  ;;  %689 = vmatprep.mubr.bf16.mxu0 %v2308_v0  ;;  %2087 = vmatpush3.bf16.msra.mxu0 %v859_v46 }
 0x1ca   :  { %2092 = vmatprep.subr.bf16.mxu0 %v2309_v54 }
 0x1cb   :  { %v518_v17 = vpop.f32.mrf.mxu1 }
 0x1cc   :  { %v2494_v20 = vadd.f32 %v518_v17, %v226_v62  ;;  %v401_v62 = vadd.f32 %v2429_v28, %v214_v47  ;;  %v411_v28 = vadd.f32 %v2450_v44, %v214_v47 }
 0x1cd   :  { %v2520_v41 = vpop.f32.mrf.mxu1 }
 0x1ce   :  { %v533_v23 = vpack.c.bf16 %v2494_v20, %v2492_v18  ;;  %v524_v5 = vpack.c.bf16 %v405_v57, %v401_v62  ;;  %v530_v27 = vpack.c.bf16 %v415_v22, %v411_v28 }
 0x1d0   :  { %1888 = vmatmul.mubr.msk.bf16.gmra.mxu0 %vm633_vm9, %v627_v21 }
 0x1d1   :  { %2088 = vmatprep.mubr.msk.bf16.mxu0 %vm2310_vm10, %v2309_v54 }
 0x1d8   :  { %2089 = vmatmul.mubr.msk.bf16.vlgmr.msra.gmra.mxu0 %vm633_vm9, %v2388_v32 }
 0x1d9   :  { %2096 = vmatprep.mubr.msk.bf16.mxu0 %vm2310_vm10, %v2309_v54 }
 0x288   :  { %v681_v45 = vpop.f32.mrf.mxu0 }
 0x28a   :  { %v683_v52 = vpop.f32.mrf.mxu0 }
 0x28c   :  { %v685_v60 = vpop.f32.mrf.mxu0 }
 0x28d   :  { %v700_v1 = vpack.c.bf16 %v685_v60, %v681_v45  ;;  %v1848_v60 = vld [vmem:[%s2613_s3] ss:$0 sm:$0xff] }
 0x28e   :  { %v687_v3 = vpop.f32.mrf.mxu0  ;;  %vm97_vm11 = vcmp.eq.s32.totalorder %v1848_v60, %v2420_v19  ;;  %vm98_vm12 = vcmp.eq.s32.totalorder %v1848_v60, %v92_v58  ;;  %v2224_v58 = vld [vmem:[#allocation2 + $0x7e0] ss:$24 sps:$4 sm:$0xff]  }
 0x28f   :  { %v701_v8 = vpack.c.bf16 %v687_v3, %v683_v52  ;;  %v704_v17 = vmul.bf16 %v700_v1, %v523_v9  ;;  %v100_v9 = vsel %vm98_vm12, 1.0, %v2309_v54 }
 0x290   :  { %v691_v13 = vpop.f32.mrf.mxu0 }
 0x291   :  { %v705_v14 = vmul.bf16 %v701_v8, %v524_v5  ;;  %v99_v8 = vsel %vm97_vm11, 1.0, %v2309_v54 }
 0x292   :  { %v693_v21 = vpop.f32.mrf.mxu0 }
 0x293   :  { %836 = vmatprep.mubr.bf16.mxu1 %v705_v14  ;;  %v2530_v14 = vpack.c.bf16 %v100_v9, %v99_v8  ;;  %v2228_v8 = vld [vmem:[#allocation2 + $0x7b0] ss:$24 sps:$4 sm:$0xff]  }
 0x294   :  { %v695_v31 = vpop.f32.mrf.mxu0  ;;  %837 = vmatmul.mubr.bf16.vlgmr.msra.gmra.mxu1 %v704_v17  ;;  %v2229_v9 = vld [vmem:[#allocation2 + $0xab0] ss:$24 sps:$4 sm:$0xff]  }
 0x295   :  { %v702_v24 = vpack.c.bf16 %v695_v31, %v691_v13 }
 0x296   :  { %v697_v26 = vpop.f32.mrf.mxu0 }
 0x297   :  { %v703_v29 = vpack.c.bf16 %v697_v26, %v693_v21  ;;  %v706_v37 = vmul.bf16 %v702_v24, %v529_v30 }
 0x298   :  { %v895_v17 = vpop.f32.mrf.mxu0 }
 0x299   :  { %v707_v33 = vmul.bf16 %v703_v29, %v530_v27 }
 0x29a   :  { %v2090_v21 = vpop.f32.mrf.mxu0 }
 0x29b   :  { %844 = vmatprep.mubr.bf16.mxu1 %v707_v33  ;;  %v2232_v21 = vld [vmem:[#allocation2 + $0x780] ss:$24 sps:$4 sm:$0xff]  }
 0x29c   :  { %845 = vmatmul.mubr.bf16.gmra.mxu1 %v706_v37  ;;  %v898_v22 = vpop.f32.mrf.mxu0 }
 0x29d   :  { %1158 = vmatprep.mubr.bf16.mxu1 %v2308_v0 }
 0x29e   :  { %v2091_v36 = vpop.f32.mrf.mxu0 }
 0x354   :  { %v1982_v44 = vpop.f32.mrf.mxu1 }
 0x356   :  { %v1983_v42 = vpop.f32.mrf.mxu1 }
 0x357   :  { %v1984_v5 = vadd.f32 %v1983_v42, %v1982_v44  ;;  %v2217_v44 = vld [vmem:[#allocation2 + $0x4ec] ss:$24 sps:$4 sm:$0xff]   ;;  %v2212_v42 = vld [vmem:[#allocation2 + $0x4e0] ss:$24 sps:$4 sm:$0xff]  }
 0x358   :  { %v1985_v45 = vpop.f32.mrf.mxu1 }
 0x35a   :  { %v1986_v47 = vpop.f32.mrf.mxu1 }
 0x35b   :  { %v1987_v1 = vadd.f32 %v1986_v47, %v1985_v45  ;;  %v2215_v45 = vld [vmem:[#allocation2 + $0x4e8] ss:$24 sps:$4 sm:$0xff]   ;;  %v2220_v47 = vld [vmem:[#allocation2 + $0x4b4] ss:$24 sps:$4 sm:$0xff]  }
 0x35c   :  { %v1988_v50 = vpop.f32.mrf.mxu1 }
 0x35d   :  { %v853_v13 = vpack.c.bf16 %v1987_v1, %v1984_v5  ;;  %v2227_v5 = vld [vmem:[#allocation2 + $0x960] ss:$24 sps:$4 sm:$0xff]  }
 0x35e   :  { %v1989_v52 = vpop.f32.mrf.mxu1 }
 0x35f   :  { %v1990_v32 = vadd.f32 %v1989_v52, %v1988_v50  ;;  %v2223_v50 = vld [vmem:[#allocation2 + $0x4bc] ss:$24 sps:$4 sm:$0xff]   ;;  %v2218_v52 = vld [vmem:[#allocation2 + $0x4b0] ss:$24 sps:$4 sm:$0xff]  }
 0x360   :  { %v1991_v57 = vpop.f32.mrf.mxu1 }
 0x362   :  { %v1992_v62 = vpop.f32.mrf.mxu1 }
 0x363   :  { %v1993_v63 = vadd.f32 %v1992_v62, %v1991_v57  ;;  %v2221_v57 = vld [vmem:[#allocation2 + $0x4b8] ss:$24 sps:$4 sm:$0xff]  }
 0x365   :  { %v854_v3 = vpack.c.bf16 %v1993_v63, %v1990_v32 }
 0x367   :  { %2093 = vmatpush3.bf16.msra.mxu0 %v854_v3  ;;  %v2226_v3 = vld [vmem:[#allocation2 + $0x660] ss:$24 sps:$4 sm:$0xff]  }
 0x368   :  { %2094 = vmatprep.subr.bf16.mxu0 %v2309_v54 }
 0x36b   :  { %2095 = vmatpush3.bf16.msra.mxu0 %v853_v13  ;;  %v2230_v13 = vld [vmem:[#allocation2 + $0x630] ss:$24 sps:$4 sm:$0xff]  }
 0x36e   :  { %2097 = vmatmul.mubr.msk.bf16.vlgmr.msra.gmra.mxu0 %vm902_vm13, %v2530_v14 }
 0x36f   :  { %2102 = vmatprep.mubr.msk.bf16.mxu0 %vm570_vm5, %v2399_v59  ;;  %v2214_v59 = vld [vmem:[#allocation2 + $0x4e4] ss:$24 sps:$4 sm:$0xff]  }
 0x370   :  { %1138 = vmatprep.subr.bf16.mxu1 %v2214_v59  ;;  %v2246_v59 = vld [vmem:[#allocation2 + $0x570] ss:$24 sps:$4 sm:$0xff]  }
 0x371   :  { %1139 = vmatpush1.bf16.msra.mxu1 %v2212_v42  ;;  %v2248_v42 = vld [vmem:[#allocation2 + $0x6c0] ss:$24 sps:$4 sm:$0xff]  }
 0x372   :  { %1140 = vmatprep.subr.bf16.mxu1 %v2220_v47  ;;  %v2250_v47 = vld [vmem:[#allocation2 + $0x540] ss:$24 sps:$4 sm:$0xff]  }
 0x375   :  { %1141 = vmatpush1.bf16.msra.mxu1 %v2218_v52  ;;  %v2252_v52 = vld [vmem:[#allocation2 + $0x690] ss:$24 sps:$4 sm:$0xff]  }
 0x376   :  { %2002 = vmatprep.subr.bf16.mxu1 %v2224_v58  ;;  %v2254_v58 = vld [vmem:[#allocation2 + $0x510] ss:$24 sps:$4 sm:$0xff]  }
 0x42e   :  { %v940_v31 = vpop.f32.mrf.mxu0 }
 0x42f   :  { %v941_v28 = vadd.f32 %v940_v31, %v895_v17  ;;  %v2231_v17 = vld [vmem:[#allocation2 + $0x930] ss:$24 sps:$4 sm:$0xff]   ;;  %v2234_v31 = vld [vmem:[#allocation2 + $0x600] ss:$24 sps:$4 sm:$0xff]  }
 0x430   :  { %v2098_v24 = vpop.f32.mrf.mxu0 }
 0x431   :  { %v947_v27 = vadd.f32 %v941_v28, %v569_v25  ;;  %v2235_v28 = vld [vmem:[#allocation2 + $0x900] ss:$24 sps:$4 sm:$0xff]   ;;  %v2237_v24 = vld [vmem:[#allocation2 + $0xa50] ss:$24 sps:$4 sm:$0xff]  }
 0x432   :  { %v943_v26 = vpop.f32.mrf.mxu0 }
 0x433   :  { %v944_v29 = vadd.f32 %v943_v26, %v898_v22  ;;  %v949_v37 = vmax.f32 %v947_v27, 0.0  ;;  %v2233_v22 = vld [vmem:[#allocation2 + $0xa80] ss:$24 sps:$4 sm:$0xff]   ;;  %v2239_v26 = vld [vmem:[#allocation2 + $0x8d0] ss:$24 sps:$4 sm:$0xff]  }
 0x434   :  { %v2099_v30 = vpop.f32.mrf.mxu0  ;;  %v2240_v27 = vld [vmem:[#allocation2 + $0x720] ss:$24 sps:$4 sm:$0xff]  }
 0x435   :  { %v948_v33 = vadd.f32 %v944_v29, %v569_v25  ;;  %v2236_v25 = vld [vmem:[#allocation2 + $0x750] ss:$24 sps:$4 sm:$0xff]   ;;  %v2241_v29 = vld [vmem:[#allocation2 + $0xa20] ss:$24 sps:$4 sm:$0xff]  }
 0x436   :  { %v2242_v30 = vld [vmem:[#allocation2 + $0x5a0] ss:$24 sps:$4 sm:$0xff]  }
 0x437   :  { %v950_v51 = vmax.f32 %v948_v33, 0.0  ;;  %v2243_v33 = vld [vmem:[#allocation2 + $0x8a0] ss:$24 sps:$4 sm:$0xff]  }
 0x439   :  { %v2536_v46 = vpack.c.bf16 %v950_v51, %v949_v37  ;;  %v2244_v37 = vld [vmem:[#allocation2 + $0x6f0] ss:$24 sps:$4 sm:$0xff]  }
 0x43a   :  { %v2245_v51 = vld [vmem:[#allocation2 + $0x9f0] ss:$24 sps:$4 sm:$0xff]  }
 0x43b   :  { %2100 = vmatprep.subr.bf16.mxu0 %v2536_v46 }
 0x43c   :  { %2101 = vmatpush3.bf16.msra.mxu0 %v2536_v46 }
 0x43d   :  { %1191 = vmatprep.subr.bf16.mxu0 %v2217_v44  ;;  %v2247_v44 = vld [vmem:[#allocation2 + $0x870] ss:$24 sps:$4 sm:$0xff]  }
 0x43f   :  { %2103 = vmatmul.mubr.msk.bf16.vlgmr.msra.gmra.mxu0 %vm570_vm5, %v2408_v4  ;;  %v2225_v4 = vld [vmem:[#allocation2 + $0xae0] ss:$24 sps:$4 sm:$0xff]  }
 0x440   :  { %1211 = vmatprep.mubr.bf16.mxu0 %v2308_v0  ;;  %1192 = vmatpush1.bf16.msra.mxu0 %v2215_v45  ;;  %v2249_v45 = vld [vmem:[#allocation2 + $0x9c0] ss:$24 sps:$4 sm:$0xff]  }
 0x441   :  { %1193 = vmatprep.subr.bf16.mxu0 %v2223_v50  ;;  %v2251_v50 = vld [vmem:[#allocation2 + $0x840] ss:$24 sps:$4 sm:$0xff]  }
 0x444   :  { %1194 = vmatpush1.bf16.msra.mxu0 %v2221_v57  ;;  %v2253_v57 = vld [vmem:[#allocation2 + $0x990] ss:$24 sps:$4 sm:$0xff]  }
 0x445   :  { %2030 = vmatprep.subr.bf16.mxu0 %v2225_v4  ;;  %v2255_v4 = vld [vmem:[#allocation2 + $0x810] ss:$24 sps:$4 sm:$0xff]  }
 0x4ff   :  { %v2104_v60 = vpop.f32.mrf.mxu0 }
 0x501   :  { %v1063_v62 = vpop.f32.mrf.mxu0 }
 0x503   :  { %v2105_v32 = vpop.f32.mrf.mxu0 }
 0x504   :  { %v1079_v36 = vpack.c.bf16 %v2105_v32, %v2104_v60 }
 0x505   :  { %v1066_v63 = vpop.f32.mrf.mxu0 }
 0x506   :  { %v1078_v1 = vpack.c.bf16 %v1066_v63, %v1063_v62 }
 0x508   :  { %1917 = vmatmul.mubr.msk.bf16.vlgmr.msra.gmra.mxu1 %vm902_vm13, %v1078_v1  ;;  %1919 = vmatmul.mubr.msk.bf16.vlgmr.msra.gmra.mxu0 %vm902_vm13, %v1078_v1 }
 0x509   :  { %1168 = vmatprep.mubr.bf16.mxu1 %v2308_v0  ;;  %1221 = vmatprep.mubr.bf16.mxu0 %v2308_v0  ;;  %v2238_v0 = vld [vmem:[#allocation2 + $0x5d0] ss:$24 sps:$4 sm:$0xff]  }
 0x50a   :  { %2003 = vmatpush3.bf16.msra.mxu1 %v2226_v3  ;;  %2031 = vmatpush3.bf16.msra.mxu0 %v2227_v5 }
 0x50b   :  { %2004 = vmatprep.subr.bf16.mxu1 %v2228_v8  ;;  %2032 = vmatprep.subr.bf16.mxu0 %v2229_v9 }
 0x50e   :  { %2005 = vmatpush3.bf16.msra.mxu1 %v2230_v13  ;;  %2033 = vmatpush3.bf16.msra.mxu0 %v2231_v17 }
 0x50f   :  { %2006 = vmatprep.subr.bf16.mxu1 %v2232_v21  ;;  %2034 = vmatprep.subr.bf16.mxu0 %v2233_v22 }
 0x510   :  { %1918 = vmatmul.mubr.msk.bf16.gmra.mxu1 %vm902_vm13, %v1079_v36  ;;  %1920 = vmatmul.mubr.msk.bf16.gmra.mxu0 %vm902_vm13, %v1079_v36 }
 0x512   :  { %2007 = vmatpush3.bf16.msra.mxu1 %v2234_v31  ;;  %2035 = vmatpush3.bf16.msra.mxu0 %v2235_v28 }
 0x513   :  { %2008 = vmatprep.subr.bf16.mxu1 %v2236_v25  ;;  %2036 = vmatprep.subr.bf16.mxu0 %v2237_v24  ;;  %v2256_v25 = vld [vmem:[#allocation2 + $0x150] ss:$24 sps:$4 sm:$0xff]  }
 0x516   :  { %2009 = vmatpush3.bf16.msra.mxu1 %v2238_v0  ;;  %2037 = vmatpush3.bf16.msra.mxu0 %v2239_v26 }
 0x517   :  { %2010 = vmatprep.subr.bf16.mxu1 %v2240_v27  ;;  %2038 = vmatprep.subr.bf16.mxu0 %v2241_v29  ;;  %v521_v29 = vadd.f32 %v2520_v41, %v2472_v2 }
 0x51a   :  { %2011 = vmatpush3.bf16.msra.mxu1 %v2242_v30  ;;  %2039 = vmatpush3.bf16.msra.mxu0 %v2243_v33 }
 0x51b   :  { %2012 = vmatprep.subr.bf16.mxu1 %v2244_v37  ;;  %2040 = vmatprep.subr.bf16.mxu0 %v2245_v51 }
 0x51e   :  { %2013 = vmatpush3.bf16.msra.mxu1 %v2246_v59  ;;  %2041 = vmatpush3.bf16.msra.mxu0 %v2247_v44 }
 0x51f   :  { %2014 = vmatprep.subr.bf16.mxu1 %v2248_v42  ;;  %2042 = vmatprep.subr.bf16.mxu0 %v2249_v45 }
 0x522   :  { %2015 = vmatpush3.bf16.msra.mxu1 %v2250_v47  ;;  %2043 = vmatpush3.bf16.msra.mxu0 %v2251_v50 }
 0x523   :  { %2016 = vmatprep.subr.bf16.mxu1 %v2252_v52  ;;  %2044 = vmatprep.subr.bf16.mxu0 %v2253_v57 }
 0x526   :  { %2017 = vmatpush3.bf16.msra.mxu1 %v2254_v58  ;;  %2045 = vmatpush3.bf16.msra.mxu0 %v2255_v4 }
 0x527   :  { %2106 = vmatprep.subr.bf16.mxu1 %v2309_v54  ;;  %2114 = vmatprep.subr.bf16.mxu0 %v2309_v54 }
 0x5c8   :  { %v1160_v60 = vpop.f32.mrf.mxu1  ;;  %v1213_v62 = vpop.f32.mrf.mxu0 }
 0x5ca   :  { %v1162_v32 = vpop.f32.mrf.mxu1  ;;  %v1215_v63 = vpop.f32.mrf.mxu0 }
 0x5cc   :  { %v1164_v1 = vpop.f32.mrf.mxu1  ;;  %v1217_v3 = vpop.f32.mrf.mxu0 }
 0x5cd   :  { %v1232_v5 = vpack.c.bf16 %v1164_v1, %v1160_v60  ;;  %v1234_v8 = vpack.c.bf16 %v1217_v3, %v1213_v62 }
 0x5ce   :  { %v1166_v9 = vpop.f32.mrf.mxu1  ;;  %v1219_v13 = vpop.f32.mrf.mxu0 }
 0x5cf   :  { %v1233_v17 = vpack.c.bf16 %v1166_v9, %v1162_v32  ;;  %v1235_v21 = vpack.c.bf16 %v1219_v13, %v1215_v63  ;;  %v1240_v24 = vmul.bf16 %v1232_v5, %v525_v39  ;;  %v1242_v0 = vmul.bf16 %v1234_v8, %v527_v11 }
 0x5d0   :  { %v1170_v22 = vpop.f32.mrf.mxu1  ;;  %v1223_v36 = vpop.f32.mrf.mxu0 }
 0x5d1   :  { %v1241_v31 = vmul.bf16 %v1233_v17, %v526_v43  ;;  %v1243_v28 = vmul.bf16 %v1235_v21, %v528_v15  ;;  %v517_v43 = vadd.f32 %v2489_v16, %v2472_v2  ;;  %v1686_v17 = vld [vmem:[#allocation4 + $0x150] sm:$0xff] }
 0x5d2   :  { %v1172_v26 = vpop.f32.mrf.mxu1  ;;  %v1225_v27 = vpop.f32.mrf.mxu0 }
 0x5d3   :  { %1472 = vmatprep.mubr.bf16.mxu1 %v1241_v31  ;;  %1521 = vmatprep.mubr.bf16.mxu0 %v1243_v28  ;;  %v534_v10 = vpack.c.bf16 %v521_v29, %v517_v43  ;;  %v1849_v28 = vld [vmem:[%s2613_s3 + $0x1] ss:$0 sm:$0xff] }
 0x5d4   :  { %v1174_v38 = vpop.f32.mrf.mxu1  ;;  %v1227_v40 = vpop.f32.mrf.mxu0  ;;  %1473 = vmatmul.mubr.bf16.vlgmr.msra.gmra.mxu1 %v1240_v24  ;;  %1522 = vmatmul.mubr.bf16.vlgmr.msra.gmra.mxu0 %v1242_v0  ;;  %vm107_vm14 = vcmp.eq.s32.totalorder %v1849_v28, %v2420_v19 }
 0x5d5   :  { %2107 = vmatpush3.bf16.msra.mxu1 %v2256_v25  ;;  %v1236_v35 = vpack.c.bf16 %v1174_v38, %v1170_v22  ;;  %v1238_v39 = vpack.c.bf16 %v1227_v40, %v1223_v36  ;;  %v1028_v36 = vld [vmem:[#allocation4 + $0x90] ss:$0 sm:$0xff]  ;;  %v108_v38 = vsel %vm107_vm14, 1.0, %v2309_v54 }
 0x5d6   :  { %v1176_v6 = vpop.f32.mrf.mxu1  ;;  %v1229_v7 = vpop.f32.mrf.mxu0  ;;  %2108 = vmatprep.subr.bf16.mxu1 %v2309_v54  ;;  %v109_v43 = vpack.c.bf16 %v108_v38, %v108_v38 }
 0x5d7   :  { %v1237_v11 = vpack.c.bf16 %v1176_v6, %v1172_v26  ;;  %v1239_v12 = vpack.c.bf16 %v1229_v7, %v1225_v27  ;;  %v1244_v2 = vmul.bf16 %v1236_v35, %v531_v55  ;;  %v1246_v16 = vmul.bf16 %v1238_v39, %v533_v23  ;;  %v1765_v35 = vld [vmem:[#allocation4 + $0x210] sm:$0xff] }
 0x5d9   :  { %v1245_v15 = vmul.bf16 %v1237_v11, %v532_v61  ;;  %v1247_v41 = vmul.bf16 %v1239_v12, %v534_v10  ;;  %2109 = vmatpush3.bf16.msra.mxu1 %v2257_v34  ;;  %v1685_v34 = vld [vmem:[#allocation4 + $0x120] sm:$0xff]  ;;  %v1763_v11 = vld [vmem:[#allocation4 + $0x1b0] sm:$0xff] }
 0x5da   :  { %2122 = vmatprep.subr.bf16.mxu1 %v2309_v54  ;;  %v1764_v10 = vld [vmem:[#allocation4 + $0x1e0] sm:$0xff] }
 0x5db   :  { %1480 = vmatprep.mubr.bf16.mxu1 %v1245_v15  ;;  %1529 = vmatprep.mubr.bf16.mxu0 %v1247_v41  ;;  %v1762_v12 = vld [vmem:[#allocation4 + $0x180] sm:$0xff] }
 0x5dc   :  { %1481 = vmatmul.mubr.bf16.gmra.mxu1 %v1244_v2  ;;  %1530 = vmatmul.mubr.bf16.gmra.mxu0 %v1246_v16  ;;  %v1687_v15 = vld [vmem:[#allocation4 + $0xc0] ss:$0 sm:$0xff] }
 0x5dd   :  { %2110 = vmatprep.mubr.msk.bf16.mxu1 %vm2310_vm10, %v2309_v54  ;;  %2118 = vmatprep.mubr.msk.bf16.mxu0 %vm2310_vm10, %v2309_v54 }
 0x5e4   :  { %2111 = vmatmul.mubr.msk.bf16.vlgmr.msra.gmra.mxu1 %vm902_vm13, %v2536_v46 }
 0x5e5   :  { %2124 = vmatprep.mubr.msk.bf16.mxu1 %vm2310_vm10, %v2309_v54 }
 0x694   :  { %v2018_v48 = vpop.f32.mrf.mxu1  ;;  %v2046_v49 = vpop.f32.mrf.mxu0 }
 0x696   :  { %v2019_v53 = vpop.f32.mrf.mxu1  ;;  %v2047_v55 = vpop.f32.mrf.mxu0 }
 0x697   :  { %v2020_v4 = vadd.f32 %v2019_v53, %v2018_v48  ;;  %v2048_v60 = vadd.f32 %v2047_v55, %v2046_v49  ;;  %v1766_v49 = vld [vmem:[#allocation4 + $0xf0] ss:$0 sm:$0xff] }
 0x698   :  { %v2021_v56 = vpop.f32.mrf.mxu1  ;;  %v2049_v61 = vpop.f32.mrf.mxu0 }
 0x699   :  { %v1524_v8 = vadd.f32 %v2048_v60, %v2020_v4 }
 0x69a   :  { %v2022_v18 = vpop.f32.mrf.mxu1  ;;  %v2050_v20 = vpop.f32.mrf.mxu0 }
 0x69b   :  { %v2023_v47 = vadd.f32 %v2022_v18, %v2021_v56  ;;  %v2051_v50 = vadd.f32 %v2050_v20, %v2049_v61 }
 0x69c   :  { %v2024_v23 = vpop.f32.mrf.mxu1  ;;  %v2052_v30 = vpop.f32.mrf.mxu0 }
 0x69d   :  { %v1527_v1 = vadd.f32 %v2051_v50, %v2023_v47 }
 0x69e   :  { %v2025_v33 = vpop.f32.mrf.mxu1  ;;  %v2053_v37 = vpop.f32.mrf.mxu0 }
 0x69f   :  { %v2026_v44 = vadd.f32 %v2025_v33, %v2024_v23  ;;  %v2054_v42 = vadd.f32 %v2053_v37, %v2052_v30  ;;  %v1538_v13 = vpack.c.bf16 %v1527_v1, %v1524_v8 }
 0x6a0   :  { %v2027_v51 = vpop.f32.mrf.mxu1  ;;  %v2055_v59 = vpop.f32.mrf.mxu0 }
 0x6a1   :  { %v1532_v62 = vadd.f32 %v2054_v42, %v2026_v44 }
 0x6a2   :  { %v2028_v46 = vpop.f32.mrf.mxu1  ;;  %v2056_v45 = vpop.f32.mrf.mxu0 }
 0x6a3   :  { %v2029_v52 = vadd.f32 %v2028_v46, %v2027_v51  ;;  %v2057_v57 = vadd.f32 %v2056_v45, %v2055_v59 }
 0x6a4   :  { %v1589_v58 = vpop.f32.mrf.mxu1 }
 0x6a5   :  { %v1535_v32 = vadd.f32 %v2057_v57, %v2029_v52 }
 0x6a6   :  { %v2112_v63 = vpop.f32.mrf.mxu1 }
 0x6a7   :  { %v1539_v3 = vpack.c.bf16 %v1535_v32, %v1532_v62 }
 0x6a8   :  { %v1592_v5 = vpop.f32.mrf.mxu1 }
 0x6a9   :  { %2115 = vmatpush3.bf16.msra.mxu0 %v1539_v3 }
 0x6aa   :  { %v2113_v9 = vpop.f32.mrf.mxu1  ;;  %2116 = vmatprep.subr.bf16.mxu0 %v2309_v54 }
 0x6ad   :  { %2117 = vmatpush3.bf16.msra.mxu0 %v1538_v13 }
 0x6ae   :  { %2128 = vmatprep.subr.mxu0 %v2309_v54 }
 0x6b0   :  { %2119 = vmatmul.mubr.msk.bf16.vlgmr.msra.gmra.mxu0 %vm902_vm13, %v2530_v14 }
 0x6b1   :  { %2132 = vmatprep.mubr.msk.f32.mxu0 %vm2310_vm10, %v2309_v54  ;;  %2129 = vmatpush3.msra.mxu0 %v1686_v17 }
 0x6b2   :  { %2130 = vmatprep.subr.mxu0 %v2309_v54 }
 0x6b3   :  { %2131 = vmatpush3.msra.mxu0 %v1685_v34 }
 0x770   :  { %v1630_v21 = vpop.f32.mrf.mxu0 }
 0x771   :  { %v1631_v22 = vadd.f32 %v1630_v21, %v1589_v58 }
 0x772   :  { %v2120_v31 = vpop.f32.mrf.mxu0 }
 0x773   :  { %v1637_v24 = vadd.f32 %v1631_v22, %v1028_v36 }
 0x774   :  { %v1633_v25 = vpop.f32.mrf.mxu0 }
 0x775   :  { %v1634_v0 = vadd.f32 %v1633_v25, %v1592_v5  ;;  %v1639_v27 = vmax.f32 %v1637_v24, 0.0 }
 0x776   :  { %v2121_v26 = vpop.f32.mrf.mxu0 }
 0x777   :  { %v1638_v14 = vadd.f32 %v1634_v0, %v1028_v36 }
 0x779   :  { %v1640_v29 = vmax.f32 %v1638_v14, 0.0 }
 0x77b   :  { %v1641_v40 = vpack.c.bf16 %v1640_v29, %v1639_v27 }
 0x77d   :  { %2123 = vmatpush3.bf16.msra.mxu1 %v1641_v40 }
 0x77e   :  { %2135 = vmatprep.subr.mxu1 %v2309_v54 }
 0x780   :  { %2125 = vmatmul.mubr.msk.bf16.vlgmr.msra.gmra.mxu1 %vm570_vm5, %v109_v43 }
 0x781   :  { %2143 = vmatprep.mubr.msk.f32.mxu1 %vm2310_vm10, %v2309_v54  ;;  %2136 = vmatpush3.msra.mxu1 %v1765_v35 }
 0x782   :  { %2137 = vmatprep.subr.mxu1 %v2309_v54 }
 0x783   :  { %2138 = vmatpush3.msra.mxu1 %v1764_v10 }
 0x784   :  { %2139 = vmatprep.subr.mxu1 %v2309_v54 }
 0x785   :  { %2140 = vmatpush3.msra.mxu1 %v1763_v11 }
 0x786   :  { %2141 = vmatprep.subr.mxu1 %v2309_v54 }
 0x787   :  { %2142 = vmatpush3.msra.mxu1 %v1762_v12 }
 0x840   :  { %v1679_v19 = vpop.f32.mrf.mxu1 }
 0x841   :  { %2133 = vmatmul.mubr.msk.f32.vlgmr.msra.gmra.mxu0 %vm570_vm5, %v1679_v19 }
 0x842   :  { %v2126_v39 = vpop.f32.mrf.mxu1 }
 0x844   :  { %v1682_v6 = vpop.f32.mrf.mxu1 }
 0x846   :  { %v2127_v7 = vpop.f32.mrf.mxu1 }
 0x901   :  { %v1757_v41 = vpop.f32.mrf.mxu0 }
 0x902   :  { %v1758_v2 = vadd.f32 %v1757_v41, %v1687_v15 }
 0x903   :  { %v2134_v16 = vpop.f32.mrf.mxu0 }
 0x904   :  { %v1761_v48 = vmax.f32 %v1758_v2, 0.0 }
 0x906   :  { %2144 = vmatmul.mubr.msk.f32.vlgmr.msra.gmra.mxu1 %vm902_vm13, %v1761_v48 }
 0x9c6   :  { %v1836_v53 = vpop.f32.mrf.mxu1 }
 0x9c7   :  { %v1837_v55 = vadd.f32 %v1836_v53, %v1766_v49 }
 0x9c8   :  { %v2145_v56 = vpop.f32.mrf.mxu1 }
 0x9c9   :  { %1841 = vst.msk [vmem:[%s2616_s6] sm:$0x3] %vm1840_vm15, %v1837_v55 }
 0x9ca   :  { %1846 = vsyncpa [#allocation3], 1 }
 0x9cb   :  { %1847 = vsyncpa [#allocation5], 1 }

</bundles_post_ra>
